<compile_context>
chip_gen: v6e
topology: v6e:2x2x1
jax: 0.10.0
libtpu: 0.0.40
codegen_flags: <defaults>
</compile_context>

<pallas_src>
import jax
import jax.numpy as jnp
from jax.experimental import pallas as pl
from jax.experimental.pallas import tpu as pltpu


def _mahalanobis_kernel(x_ref, mean_ref, icov_ref, o_ref):
    """One grid step: TM rows of x -> one (1, TM) lane-dense row of distances."""
    # delta in f32 (cancellation-safe for rows near the mean); cast to the streaming
    # dtype only for the MXU operand.  Both casts are no-ops for f32 inputs.
    delta_f32 = x_ref[...].astype(jnp.float32) - mean_ref[...].astype(jnp.float32)  # [TM, D]
    t = jnp.dot(delta_f32.astype(x_ref.dtype), icov_ref[...],
                preferred_element_type=jnp.float32)                  # [TM, D] f32 (MXU)
    m = jnp.sum(delta_f32 * t, axis=-1)                              # [TM]    f32 (VPU/XLU)
    m = jnp.maximum(m, 0.0) + 1e-12                                  # PSD guard + eps
    o_ref[...] = jnp.sqrt(m)[None, :]                                # (1, TM) lane-major store


def prepare_gaussin_head_params(obj_mean, inv_obj_cov, dtype):
    """Cast/reshape the module parameters ONCE (call when params change, not per forward)."""
    D = inv_obj_cov.shape[-1]
    mean2d = jnp.asarray(obj_mean, dtype=dtype).reshape(1, D)
    icov = jnp.asarray(inv_obj_cov, dtype=dtype).reshape(D, D)
    return mean2d, icov


def _vmem_capacity_bytes():
    try:
        return int(pltpu.get_tpu_info().vmem_capacity_bytes)
    except Exception:
        return 64 << 20  # conservative fallback == v7x per-TC physical VMEM


def gaussin_head_forward(x, obj_mean2d, inv_obj_cov):
    """Eval-mode GaussinHead forward: Mahalanobis distance for each row of x.

    x: [B, D]; obj_mean2d: [1, D]; inv_obj_cov: [D, D], both already in x's dtype
    (use prepare_gaussin_head_params).  Pass bf16 for the bandwidth-optimal path
    (f32 delta / accumulation inside the kernel).  Returns f32 [B] (device array,
    no host sync -- caller decides when to block).
    """
    B, D = x.shape
    assert obj_mean2d.shape == (1, D) and inv_obj_cov.shape == (D, D)
    assert obj_mean2d.dtype == x.dtype and inv_obj_cov.dtype == x.dtype, (
        "cast params once with prepare_gaussin_head_params(..., dtype=x.dtype)")
    dt = x.dtype
    isz = jnp.dtype(dt).itemsize

    # ---- per-generation VMEM budget (v7x: 64 MiB/TC; v5e/v6e: 128 MiB) ----
    vmem_cap = int(_vmem_capacity_bytes() * 0.8)

    # Per-row VMEM cost of one grid step:
    #   double-buffered x tile (2*D*isz) + f32 temporaries delta_f32 & MXU result t
    #   (2*D*4) + double-buffered (1, tm) f32 output row (2*4).
    per_row = 2 * D * isz + 2 * D * 4 + 2 * 4
    # Resident operands (constant index_map); budgeted 2x in case the compiler still
    # double-buffers constant-index blocks.
    resident = 2 * (D * D + D) * isz
    headroom = 4 << 20
    avail = vmem_cap - resident - headroom
    # TODO(synk): large-D regime where the resident DxD inv_cov doesn't fit needs K-tiling.
    assert avail > 0, "hidden_dim too large for a VMEM-resident inv_obj_cov"

    # Row tile: as large as the budget allows, capped at ~4 MiB of x per buffer
    # (per-step overhead is fully amortized well before that), multiple of 128.
    tm_cap = min(avail // per_row, max((4 << 20) // (D * isz), 128))
    tm_cap = max(128, (tm_cap // 128) * 128)

    if B <= 256:
        tm = B  # single full-extent tile (legal for any B; tiny-batch eval path)
    else:
        # >= 2 (aim >= 4) grid steps: keeps both v7x TensorCores busy and restores
        # DMA/compute overlap; neutral on single-TC chips while tiles stay large.
        tm_quarter = ((((B + 3) // 4) + 127) // 128) * 128
        tm = max(128, min(tm_cap, tm_quarter))
    grid = ((B + tm - 1) // tm,)

    need = tm * per_row + resident + headroom
    vmem_limit = int(min(max(need, 32 << 20), vmem_cap))

    cparams = pltpu.CompilerParams(
        dimension_semantics=("parallel",),
        vmem_limit_bytes=vmem_limit,
    )
    cost = pl.CostEstimate(
        flops=2 * B * D * D + 4 * B * D,
        transcendentals=B,  # sqrt epilogue
        bytes_accessed=B * D * isz + (D * D + D) * isz + B * 4,
    )

    out = pl.pallas_call(
        _mahalanobis_kernel,
        out_shape=jax.ShapeDtypeStruct((1, B), jnp.float32),
        grid=grid,
        in_specs=[
            pl.BlockSpec((tm, D), lambda i: (i, 0)),   # x: streamed batch tiles (double-buffered)
            pl.BlockSpec((1, D), lambda i: (0, 0)),    # obj_mean: VMEM-resident
            pl.BlockSpec((D, D), lambda i: (0, 0)),    # inv_obj_cov: VMEM-resident, DMA'd once
        ],
        out_specs=pl.BlockSpec((1, tm), lambda i: (0, i)),  # lane-dense distance row
        compiler_params=cparams,
        cost_estimate=cost,
    )(x, obj_mean2d, inv_obj_cov)
    return out[0, :]


if __name__ == "__main__":
    key = jax.random.PRNGKey(0)

    def reference(x, mean, icov):
        delta = x - mean[None, :]
        return jnp.sqrt(jnp.einsum('bi,ij,bj->b', delta, icov, delta) + 1e-12)

    # --- Test 1: module-init params (obj_mean = ones(D), inv_obj_cov = eye(D)),
    #     small f32 shapes, single full-extent tile. ---
    B, D = 8, 32
    obj_mean = jnp.ones((D,), dtype=jnp.float32)
    inv_obj_cov = jnp.eye(D, dtype=jnp.float32)
    x = jax.random.normal(key, (B, D), dtype=jnp.float32)
    mean2d, icov = prepare_gaussin_head_params(obj_mean, inv_obj_cov, x.dtype)

    out = jax.block_until_ready(gaussin_head_forward(x, mean2d, icov))
    ref = reference(x, obj_mean, inv_obj_cov)
    assert out.shape == (B,)
    assert jnp.allclose(out, ref, rtol=1e-5, atol=1e-5), (out, ref)

    # --- Test 2: multi-tile grid with a partial last tile + bf16 bandwidth path
    #     (bf16 MXU operands, f32 delta/accumulation, non-identity PSD inv_cov;
    #     params cast ONCE outside the forward path). ---
    B2, D2 = 272, 128
    key2, key3 = jax.random.split(key)
    mean2 = jax.random.normal(key2, (D2,), dtype=jnp.float32)
    a = jax.random.normal(key3, (D2, D2), dtype=jnp.float32) * 0.05
    icov2 = jnp.eye(D2, dtype=jnp.float32) + a @ a.T
    x2 = jax.random.normal(key, (B2, D2), dtype=jnp.float32)

    xb = x2.astype(jnp.bfloat16)
    mean2d_b, icov_b = prepare_gaussin_head_params(mean2, icov2, jnp.bfloat16)
    out2 = jax.block_until_ready(gaussin_head_forward(xb, mean2d_b, icov_b))
    ref2 = reference(xb.astype(jnp.float32), mean2d_b[0].astype(jnp.float32),
                     icov_b.astype(jnp.float32))
    assert out2.shape == (B2,)
    assert jnp.allclose(out2, ref2, rtol=2e-2, atol=2e-2), (out2, ref2)

    print("KERNEL_OK")
</pallas_src>

<mosaic_0001>
module attributes {stable_mosaic.version = 11 : i64} {
  func.func @_mahalanobis_kernel(%arg0: i32, %arg1: memref<8x32xf32, #tpu.memory_space<vmem>>, %arg2: memref<1x32xf32, #tpu.memory_space<vmem>>, %arg3: memref<32x32xf32, #tpu.memory_space<vmem>>, %arg4: memref<1x8xf32, #tpu.memory_space<vmem>>) attributes {dimension_semantics = [#tpu.dimension_semantics<parallel>], iteration_bounds = array<i64: 1>, scalar_prefetch = 0 : i64, scratch_operands = 0 : i64, tpu.core_type = #tpu.core_type<tc>, window_params = [{transform_indices = @transform_0, window_bounds = array<i64: 8, 32>}, {pipeline_mode = #tpu.pipeline_mode<synchronous>, transform_indices = @transform_1, window_bounds = array<i64: 1, 32>}, {pipeline_mode = #tpu.pipeline_mode<synchronous>, transform_indices = @transform_2, window_bounds = array<i64: 32, 32>}, {transform_indices = @transform_3, window_bounds = array<i64: 1, 8>}]} {
    %c0 = arith.constant 0 : index
    %c0_0 = arith.constant 0 : index
    %0 = vector.load %arg1[%c0, %c0_0] : memref<8x32xf32, #tpu.memory_space<vmem>>, vector<8x32xf32>
    %c0_1 = arith.constant 0 : index
    %c0_2 = arith.constant 0 : index
    %1 = vector.load %arg2[%c0_1, %c0_2] : memref<1x32xf32, #tpu.memory_space<vmem>>, vector<1x32xf32>
    %2 = vector.broadcast %1 : vector<1x32xf32> to vector<8x32xf32>
    %3 = arith.subf %0, %2 : vector<8x32xf32>
    %c0_3 = arith.constant 0 : index
    %c0_4 = arith.constant 0 : index
    %4 = vector.load %arg3[%c0_3, %c0_4] : memref<32x32xf32, #tpu.memory_space<vmem>>, vector<32x32xf32>
    %cst = arith.constant dense<0.000000e+00> : vector<8x32xf32>
    %5 = tpu.matmul %3, %4, %cst {dimension_numbers = #tpu.dot_dimension_numbers<[1], [0], [0], [1], [0, 0, 1, 1], [], []>} : vector<8x32xf32>, vector<32x32xf32>, vector<8x32xf32> -> vector<8x32xf32>
    %6 = arith.mulf %3, %5 : vector<8x32xf32>
    %cst_5 = arith.constant dense<0.000000e+00> : vector<8xf32>
    %7 = vector.multi_reduction <add>, %6, %cst_5 [1] : vector<8x32xf32> to vector<8xf32>
    %cst_6 = arith.constant 0.000000e+00 : f32
    %8 = vector.broadcast %cst_6 : f32 to vector<8xf32>
    %9 = arith.maximumf %7, %8 : vector<8xf32>
    %cst_7 = arith.constant 9.99999996E-13 : f32
    %10 = vector.broadcast %cst_7 : f32 to vector<8xf32>
    %11 = arith.addf %9, %10 : vector<8xf32>
    %12 = math.sqrt %11 : vector<8xf32>
    %13 = vector.shape_cast %12 : vector<8xf32> to vector<1x8xf32>
    %c0_8 = arith.constant 0 : index
    %c0_9 = arith.constant 0 : index
    %14 = vector.load %arg4[%c0_8, %c0_9] : memref<1x8xf32, #tpu.memory_space<vmem>>, vector<1x8xf32>
    tpu.vector_store %arg4[%c0_8, %c0_9], %13 {strides = array<i32>} : memref<1x8xf32, #tpu.memory_space<vmem>>, vector<1x8xf32>,
    return
  }
  func.func @transform_0(%arg0: i32) -> (i32, i32) {
    %c0_i32 = arith.constant 0 : i32
    %c0_i32_0 = arith.constant 0 : i32
    return %arg0, %c0_i32 : i32, i32
  }
  func.func @transform_1(%arg0: i32) -> (i32, i32) {
    %c0_i32 = arith.constant 0 : i32
    %c0_i32_0 = arith.constant 0 : i32
    %c0_i32_1 = arith.constant 0 : i32
    return %c0_i32, %c0_i32_0 : i32, i32
  }
  func.func @transform_2(%arg0: i32) -> (i32, i32) {
    %c0_i32 = arith.constant 0 : i32
    %c0_i32_0 = arith.constant 0 : i32
    %c0_i32_1 = arith.constant 0 : i32
    return %c0_i32, %c0_i32_0 : i32, i32
  }
  func.func @transform_3(%arg0: i32) -> (i32, i32) {
    %c0_i32 = arith.constant 0 : i32
    %c0_i32_0 = arith.constant 0 : i32
    return %c0_i32, %arg0 : i32, i32
  }
}

</mosaic_0001>

<bundles_post_ra>
// kernel: tpu_custom_call.1
= control target key start
LH: loop header
LB: loop body
LE: loop exit
PB: predicated region body
PF: predicated region fallthrough
CT: control target
= control target key end

     0   :  { %8 = vsyncpa [#allocation3], 0  ;;  %s299_s0 = inlined_call_operand.hbm [shape: f32[8,32], index: 0, kind: input, shape index: {}]   ;;  %s300_s1 = inlined_call_operand.vmem [shape: f32[1,32], index: 1, kind: input, shape index: {}]   ;;  %s301_s2 = inlined_call_operand.hbm [shape: f32[32,32], index: 2, kind: input, shape index: {}]   ;;  %s302_s3 = inlined_call_operand.hbm [shape: f32[1,8], index: 3, kind: output, shape index: {}]  }
   0x1   :  { %9 = vsyncpa [#allocation6], 0 }
   0x2   :  { %10 = vsyncpa [#allocation4], 0  ;;  %s260_s12 = smov [#allocation2]   ;;  %s261_s14 = smov [#allocation5]  }
   0x3   :  { %s17_s13 = sshll.u32 %s260_s12, 4  ;;  %s28_s15 = sshll.u32 %s261_s14, 4  ;;  %s18_s13 = int_to_ptr.vmem [resolvable:$true] %s17_s13  ;;  %s29_s15 = int_to_ptr.vmem [resolvable:$true] %s28_s15 }
   0x4   :  { %s202_s16 = scalar_lea.vmem %s18_s13, 128  ;;  %p207_p1 = scmp.lt.s32.totalorder %s18_s13, %s18_s13 }
   0x5   :  { %p203_p0 = scmp.ne.s32.totalorder %s18_s13, %s202_s16  ;;  %p208_p2 = scmp.lt.s32.totalorder %s202_s16, %s202_s16 }
   0x7   :  { %p209_p3 = por %p208_p2, %p207_p1 }
   0x9   :  { %p210_p4 = pnand %p209_p3, %p203_p0 }
   0xb   :  { %213 = shalt.err (!%p210_p4)
}
   0xc   :  { %20 = dma.hbm_to_vmem [thread:$0]  %s299_s0, 128, %s18_s13, [#allocation3]  }
   0xd   :  { %s222_s19 = scalar_lea.vmem %s29_s15, 512  ;;  %p227_p6 = scmp.lt.s32.totalorder %s29_s15, %s29_s15 }
   0xe   :  { %p223_p5 = scmp.ne.s32.totalorder %s29_s15, %s222_s19  ;;  %p228_p7 = scmp.lt.s32.totalorder %s222_s19, %s222_s19 }
  0x10   :  { %p229_p8 = por %p228_p7, %p227_p6 }
  0x12   :  { %p230_p9 = pnand %p229_p8, %p223_p5 }
  0x14   :  { %233 = shalt.err (!%p230_p9)
}
  0x15   :  { %s262_s20 = smov 128   ;;  %s263_s21 = smov 8  }
  0x16   :  { %34 = dma.hbm_to_vmem [thread:$0]  %s301_s2, 512, %s29_s15, [#allocation6], %s262_s20, %s262_s20, %s263_s21  }
  0x17   :  { %254 = dma.done.wait [#allocation3], 128  }
  0x18   :  { %255 = vsyncadd [#allocation3], 4294967168 }
  0x19   :  { %256 = dma.done.wait [#allocation6], 512  }
  0x1a   :  { %257 = vsyncadd [#allocation6], 4294966784  ;;  %v264_v0 = vmov 0.0   ;;  %vm265_vm0 = vmmov 0   ;;  %v53_v1 = vld [vmem:[#allocation5 + $0x18] sm:$0xff]  ;;  %v52_v2 = vld [vmem:[#allocation5 + $0x10] sm:$0xff]  ;;  %v142_v15 = vlaneseq }
  0x1b   :  { %174 = vmatprep.subr.mxu0 %v264_v0  ;;  %182 = vmatprep.mubr.msk.f32.mxu0 %vm265_vm0, %v264_v0  ;;  %v41_v3 = vld [vmem:[#allocation2] sm:$0xff]  ;;  %v51_v5 = vld [vmem:[#allocation5 + $0x8] sm:$0xff]  ;;  %v50_v6 = vld [vmem:[#allocation5] sm:$0xff]  ;;  %vm54_vm1 = vcmask 261120   ;;  %vm149_vm4 = vcmask 57344  }
  0x1c   :  { %175 = vmatpush3.msra.mxu0 %v53_v1  ;;  %v167_v4 = vld [vmem:[%s300_s1] ss:$0 sm:$0xff]  ;;  %v143_v16 = vand.u32 127, %v142_v15  ;;  %v145_v17 = vshrl.u32 %v142_v15, 7  ;;  %s266_s1 = smov [#allocation7]  }
  0x1d   :  { %176 = vmatprep.subr.mxu0 %v264_v0  ;;  %v49_v7 = vsub.f32 %v41_v3, %v167_v4  ;;  %s157_s2 = sshll.u32 %s266_s1, 4  ;;  %s158_s2 = int_to_ptr.vmem [resolvable:$true] %s157_s2 }
  0x1e   :  { %177 = vmatpush3.msra.mxu0 %v52_v2  ;;  %v146_v20 = vsub.s32 %v143_v16, %v145_v17  ;;  %s234_s25 = scalar_lea.vmem %s158_s2, 16  ;;  %s238_s26 = scalar_lea.vmem %s158_s2, 32 }
  0x1f   :  { %178 = vmatprep.subr.mxu0 %v264_v0  ;;  %p235_p10 = scmp.ne.s32.totalorder %s158_s2, %s234_s25  ;;  %p239_p11 = scmp.lt.s32.totalorder %s158_s2, %s158_s2 }
  0x20   :  { %179 = vmatpush3.msra.mxu0 %v51_v5  ;;  %p240_p12 = scmp.lt.s32.totalorder %s238_s26, %s234_s25 }
  0x21   :  { %180 = vmatprep.subr.mxu0 %v264_v0 }
  0x22   :  { %181 = vmatpush3.msra.mxu0 %v50_v6  ;;  %p241_p13 = por %p240_p12, %p239_p11 }
  0x23   :  { %183 = vmatmul.mubr.msk.f32.vlgmr.msra.gmra.mxu0 %vm54_vm1, %v49_v7 }
  0x24   :  { %p242_p0 = pnand %p241_p13, %p235_p10 }
  0xe3   :  { %v124_v8 = vpop.f32.mrf.mxu0 }
  0xe4   :  { %v128_v9 = vmul.f32 %v124_v8, %v49_v7 }
  0xe5   :  { %v184_v10 = vpop.f32.mrf.mxu0 }
  0xe6   :  { %v129_v11 = vsel %vm54_vm1, %v128_v9, 0.0 }
  0xe7   :  { %130 = vadd.xlane.f32.xlu0 %v129_v11 }
 0x170   :  { %v131_v12 = vpop.xlane.xlu0 %130 }
 0x171   :  { %v132_v13 = vmax.f32 %v131_v12, 0.0 }
 0x173   :  { %v133_v14 = vadd.f32 1e-12, %v132_v13 }
 0x175   :  { %192 = vrsqrt.f32 %v133_v14  ;;  %vm136_vm2 = vcmp.eq.f32.partialorder %v133_v14, inf  ;;  %v139_v21 = vand.u32 2147483648, %v133_v14  ;;  %vm138_vm3 = vcmp.eq.f32.partialorder %v133_v14, 0.0 }
 0x182   :  { %v193_v18 = vpop.eup %192 }
 0x183   :  { %v135_v19 = vmul.f32 %v193_v18, %v133_v14 }
 0x185   :  { %v137_v22 = vsel %vm136_vm2, %v133_v14, %v135_v19 }
 0x186   :  { %v140_v23 = vsel %vm138_vm3, %v139_v21, %v137_v22 }
 0x187   :  { %v147_v24 = vrot.slane %v140_v23, %v146_v20 }
 0x189   :  { %150 = vst.msk [vmem:[#allocation7] sm:$0x1] %vm149_vm4, %v147_v24 }
 0x18a   :  { %245 = shalt.err (!%p242_p0)
}
 0x18b   :  { %160 = dma.vmem_to_hbm [thread:$0]  %s158_s2, 16, %s302_s3, [#allocation4]  }
 0x18c   :  { %258 = dma.done.wait [#allocation4], 16  }
 0x18d   :  { %259 = vsyncadd [#allocation4], 4294967280 }
 0x18e   :  { %164 = vsyncpa [#allocation3], 1 }
 0x18f   :  { %165 = vsyncpa [#allocation6], 1 }
 0x190   :  { %166 = vsyncpa [#allocation4], 1 }

</bundles_post_ra>
